<compile_context>
chip_gen: v7x
topology: tpu7x:2x2x1
jax: 0.10.0
libtpu: 0.0.40
codegen_flags: <defaults>
</compile_context>

<pallas_src>
import math
import functools

import jax
import jax.numpy as jnp
from jax import lax
from jax.experimental import pallas as pl
from jax.experimental.pallas import tpu as pltpu


def _round_up(x, n):
    return ((x + n - 1) // n) * n


def _arcface_kernel(emb_ref, w_ref, label_ref, out_ref, *,
                    s, cos_m, sin_m, mm, threshold, tn, use_bf16):
    """One (tb, tn) tile of ArcFace logits.

    emb_ref   : (tb, E)  bf16/f32 -- embedding rows (re-streamed per class tile; tiny)
    w_ref     : (E, tn)  f32      -- RAW weight columns (read from HBM once total)
    label_ref : (tb, 1)  int32    -- target class id per row (global index)
    out_ref   : (tb, tn)          -- scaled logits
    """
    j = pl.program_id(0)  # class-tile index (outer grid axis)

    # ---- fused column L2 normalization (computed from the VMEM-resident tile) ----
    w_f32 = w_ref[...].astype(jnp.float32)                          # (E, tn)
    norm_sq = jnp.sum(w_f32 * w_f32, axis=0, keepdims=True)         # (1, tn)
    inv_norm = jnp.where(norm_sq > 0.0, lax.rsqrt(norm_sq), 0.0)    # guard zero/garbage cols

    # ---- cos(theta) = <emb, w> * 1/||w||  (MXU, f32 accumulation) ----
    w_mm = w_f32.astype(jnp.bfloat16) if use_bf16 else w_f32
    cos_theta = jnp.dot(emb_ref[...], w_mm,
                        preferred_element_type=jnp.float32)
    cos_theta = cos_theta * inv_norm                                # (1, tn) broadcasts
    cos_theta = jnp.clip(cos_theta, -1.0, 1.0)

    # ---- margin math (VPU elementwise, f32; sqrt on EUP); `* s` folded in ----
    sin_theta = jnp.sqrt(jnp.maximum(1.0 - cos_theta * cos_theta, 0.0))
    ct_s = cos_theta * s                                            # s * cos(theta)
    ctm_s = cos_theta * (s * cos_m) - sin_theta * (s * sin_m)       # s * cos(theta + m)
    # Easy-margin fallback: where cos(theta) - threshold <= 0 use cos(theta) - mm.
    ctm_s = jnp.where(cos_theta - threshold <= 0.0, ct_s - (s * mm), ctm_s)

    # ---- scatter: only (row, label[row]) entries take the margin value ----
    local_label = label_ref[...] - j * tn                           # (tb, 1), tile-local
    col = lax.broadcasted_iota(jnp.int32, cos_theta.shape, 1)       # (tb, tn)
    is_target = col == local_label

    out_ref[...] = jnp.where(is_target, ctm_s, ct_s).astype(out_ref.dtype)


def arcface_forward(embeddings, labels, kernel, *, s=64.0, m=0.5,
                    tb=None, tn=None, use_bf16=True, out_dtype=jnp.float32):
    """ArcFace logits.

    embeddings: (B, E) f32, labels: (B,) int, kernel: (E, C) f32 (raw, un-normalized).
    Returns (B, C) logits (out_dtype, default f32), matching the PyTorch forward.
    use_bf16=True runs the matmul inputs in bf16 (f32 accumulation); the column
    normalization and all margin math stay f32.
    """
    B, E = embeddings.shape
    E2, C = kernel.shape
    assert E == E2, "embedding_size mismatch"

    cos_m = math.cos(m)
    sin_m = math.sin(m)
    mm = sin_m * m
    threshold = math.cos(math.pi - m)

    mat_dtype = jnp.bfloat16 if use_bf16 else jnp.float32
    esz = 2 if use_bf16 else 4
    out_esz = jnp.dtype(out_dtype).itemsize

    emb_in = embeddings.astype(mat_dtype)          # tiny (B, E)
    w_in = kernel.astype(jnp.float32)              # RAW weight, normalized in-kernel
    labels_2d = labels.astype(jnp.int32).reshape(B, 1)

    # ---------------- generation-aware VMEM budget ----------------
    try:
        vmem_cap = int(pltpu.get_tpu_info().vmem_capacity_bytes)
    except Exception:
        vmem_cap = 64 << 20    # conservative fallback (v7x per-core capacity)

    # ---------------- tile selection ----------------
    if tb is None:
        tb = _round_up(min(B, 256), 16)   # sublane-aligned, unmasked stores
    else:
        tb = _round_up(int(tb), 8)

    def footprint(tn_):
        # double-buffered pipeline blocks (weight is f32 now) ...
        dbuf = 2 * (E * tn_ * 4 + tb * tn_ * out_esz + tb * E * esz + tb * 128 * 4)
        # ... plus a generous allowance for in-kernel temporaries
        # (bf16 weight cast + f32 epilogue values).
        internal = E * tn_ * 2 + 4 * tb * tn_ * 4
        return dbuf + internal

    c128 = _round_up(C, 128)
    if tn is None:
        budget = int(vmem_cap * 0.60)
        tn = 128
        for cand in (8192, 4096, 2048, 1024, 512, 256, 128):
            if footprint(cand) <= budget:
                tn = cand
                break
    tn = max(128, _round_up(int(tn), 128))
    if c128 <= tn:                 # whole class axis fits one lane-dense tile
        tn = c128

    vmem_limit = int(min(vmem_cap * 0.90,
                         max(footprint(tn) + (8 << 20), 32 << 20)))

    kernel_fn = functools.partial(
        _arcface_kernel, s=float(s), cos_m=cos_m, sin_m=sin_m, mm=mm,
        threshold=threshold, tn=tn, use_bf16=use_bf16)

    # Class axis OUTER (weight tile j-resident -> E*C read once from HBM),
    # batch axis inner.  Edge blocks (B % tb, C % tn) are handled by Pallas'
    # masked edge stores; no padded HBM copies are materialized.
    grid = (pl.cdiv(C, tn), pl.cdiv(B, tb))
    out = pl.pallas_call(
        kernel_fn,
        out_shape=jax.ShapeDtypeStruct((B, C), out_dtype),
        grid_spec=pltpu.PrefetchScalarGridSpec(
            num_scalar_prefetch=0,
            grid=grid,
            in_specs=[
                pl.BlockSpec((tb, E), lambda j, i: (i, 0)),   # embeddings (re-streamed, tiny)
                pl.BlockSpec((E, tn), lambda j, i: (0, j)),   # raw f32 weight columns (resident over i)
                pl.BlockSpec((tb, 1), lambda j, i: (i, 0)),   # labels
            ],
            out_specs=pl.BlockSpec((tb, tn), lambda j, i: (i, j)),
        ),
        compiler_params=pltpu.CompilerParams(
            dimension_semantics=("parallel", "parallel"),
            vmem_limit_bytes=vmem_limit),
    )(emb_in, w_in, labels_2d)

    return out


# ---------------- pure-JAX references (for validation only) ----------------

def _reference_forward_f32(embeddings, labels, kernel, *, s=64.0, m=0.5):
    """Exact f32 mirror of the PyTorch module."""
    cos_m = math.cos(m)
    sin_m = math.sin(m)
    mm = sin_m * m
    threshold = math.cos(math.pi - m)

    kn = kernel / jnp.sqrt(jnp.sum(kernel * kernel, axis=0, keepdims=True))
    cos_theta = jnp.clip(embeddings @ kn, -1.0, 1.0)
    sin_theta = jnp.sqrt(jnp.maximum(1.0 - cos_theta ** 2, 0.0))
    cos_theta_m = cos_theta * cos_m - sin_theta * sin_m
    cos_theta_m = jnp.where(cos_theta - threshold <= 0.0,
                            cos_theta - mm, cos_theta_m)
    onehot = jax.nn.one_hot(labels, kernel.shape[1], dtype=jnp.bool_)
    return jnp.where(onehot, cos_theta_m, cos_theta) * s


def _reference_forward_matched(embeddings, labels, kernel, *, s=64.0, m=0.5,
                               use_bf16=True):
    """Reference mirroring the kernel's precision choices (bf16 matmul inputs,
    f32 accumulation, post-hoc inverse-norm scaling)."""
    cos_m = math.cos(m)
    sin_m = math.sin(m)
    mm = sin_m * m
    threshold = math.cos(math.pi - m)

    mat_dtype = jnp.bfloat16 if use_bf16 else jnp.float32
    norm_sq = jnp.sum(kernel.astype(jnp.float32) ** 2, axis=0)
    inv = jnp.where(norm_sq > 0.0, lax.rsqrt(norm_sq), 0.0)
    cos_theta = jnp.dot(embeddings.astype(mat_dtype), kernel.astype(mat_dtype),
                        preferred_element_type=jnp.float32) * inv
    cos_theta = jnp.clip(cos_theta, -1.0, 1.0)
    sin_theta = jnp.sqrt(jnp.maximum(1.0 - cos_theta * cos_theta, 0.0))
    cos_theta_m = cos_theta * cos_m - sin_theta * sin_m
    cos_theta_m = jnp.where(cos_theta - threshold <= 0.0,
                            cos_theta - mm, cos_theta_m)
    onehot = jax.nn.one_hot(labels, kernel.shape[1], dtype=jnp.bool_)
    return jnp.where(onehot, cos_theta_m, cos_theta) * s


if __name__ == "__main__":
    # Small deterministic shapes consistent with the module's forward:
    # embeddings (B, E), weight (E, C), labels (B,).
    B, E, C = 16, 64, 512
    key = jax.random.PRNGKey(0)
    k_emb, k_w, k_lab = jax.random.split(key, 3)

    embeddings = jax.random.normal(k_emb, (B, E), dtype=jnp.float32)
    # Deterministic param init mimicking uniform_(-1,1).renorm_(2,1,1e-5).mul_(1e5)
    # (host-side constructor setup; not part of the kernel).
    kernel = jax.random.uniform(k_w, (E, C), dtype=jnp.float32,
                                minval=-1.0, maxval=1.0)
    col_norm = jnp.sqrt(jnp.sum(kernel * kernel, axis=0, keepdims=True))
    kernel = jnp.where(col_norm > 1e-5, kernel * (1e-5 / col_norm), kernel) * 1e5

    labels = jax.random.randint(k_lab, (B,), 0, C, dtype=jnp.int32)

    # 1) f32 path: tight check of the kernel wiring against the exact reference.
    out_f32 = jax.block_until_ready(
        arcface_forward(embeddings, labels, kernel, use_bf16=False))
    ref_f32 = _reference_forward_f32(embeddings, labels, kernel)
    assert out_f32.shape == (B, C)
    assert jnp.allclose(out_f32, ref_f32, atol=2e-3, rtol=2e-3), \
        "f32 path mismatch vs reference"

    # 2) Default bf16 fast path: check against the precision-matched reference.
    out_bf16 = jax.block_until_ready(
        arcface_forward(embeddings, labels, kernel))        # use_bf16=True default
    ref_bf16 = _reference_forward_matched(embeddings, labels, kernel, use_bf16=True)
    assert out_bf16.shape == (B, C)
    assert jnp.allclose(out_bf16, ref_bf16, atol=5e-2, rtol=5e-2), \
        "bf16 path mismatch vs precision-matched reference"

    print("KERNEL_OK")
</pallas_src>

<mosaic_0001>
module attributes {stable_mosaic.version = 11 : i64} {
  func.func @_arcface_kernel(%arg0: i32, %arg1: i32, %arg2: memref<16x64xf32, #tpu.memory_space<vmem>>, %arg3: memref<64x512xf32, #tpu.memory_space<vmem>>, %arg4: memref<16x1xi32, #tpu.memory_space<vmem>>, %arg5: memref<16x512xf32, #tpu.memory_space<vmem>>) attributes {dimension_semantics = [#tpu.dimension_semantics<parallel>, #tpu.dimension_semantics<parallel>], iteration_bounds = array<i64: 1, 1>, scalar_prefetch = 0 : i64, scratch_operands = 0 : i64, tpu.core_type = #tpu.core_type<tc>, window_params = [{transform_indices = @transform_0, window_bounds = array<i64: 16, 64>}, {transform_indices = @transform_1, window_bounds = array<i64: 64, 512>}, {transform_indices = @transform_2, window_bounds = array<i64: 16, 1>}, {transform_indices = @transform_3, window_bounds = array<i64: 16, 512>}]} {
    %c0 = arith.constant 0 : index
    %c0_0 = arith.constant 0 : index
    %0 = vector.load %arg3[%c0, %c0_0] : memref<64x512xf32, #tpu.memory_space<vmem>>, vector<64x512xf32>
    %1 = arith.mulf %0, %0 : vector<64x512xf32>
    %cst = arith.constant dense<0.000000e+00> : vector<512xf32>
    %2 = vector.multi_reduction <add>, %1, %cst [0] : vector<64x512xf32> to vector<512xf32>
    %3 = vector.shape_cast %2 : vector<512xf32> to vector<1x512xf32>
    %cst_1 = arith.constant 0.000000e+00 : f32
    %4 = vector.broadcast %cst_1 : f32 to vector<1x512xf32>
    %5 = arith.cmpf ogt, %3, %4 : vector<1x512xf32>
    %6 = math.rsqrt %3 : vector<1x512xf32>
    %cst_2 = arith.constant 0.000000e+00 : f32
    %7 = vector.broadcast %cst_2 : f32 to vector<1x512xf32>
    %8 = arith.select %5, %6, %7 : vector<1x512xi1>, vector<1x512xf32>
    %c0_3 = arith.constant 0 : index
    %c0_4 = arith.constant 0 : index
    %9 = vector.load %arg2[%c0_3, %c0_4] : memref<16x64xf32, #tpu.memory_space<vmem>>, vector<16x64xf32>
    %cst_5 = arith.constant dense<0.000000e+00> : vector<16x512xf32>
    %10 = tpu.matmul %9, %0, %cst_5 {dimension_numbers = #tpu.dot_dimension_numbers<[1], [0], [0], [1], [0, 0, 1, 1], [], []>} : vector<16x64xf32>, vector<64x512xf32>, vector<16x512xf32> -> vector<16x512xf32>
    %11 = vector.broadcast %8 : vector<1x512xf32> to vector<16x512xf32>
    %12 = arith.mulf %10, %11 : vector<16x512xf32>
    %cst_6 = arith.constant -1.000000e+00 : f32
    %cst_7 = arith.constant 1.000000e+00 : f32
    %13 = vector.broadcast %cst_6 : f32 to vector<16x512xf32>
    %14 = arith.maximumf %13, %12 : vector<16x512xf32>
    %15 = vector.broadcast %cst_7 : f32 to vector<16x512xf32>
    %16 = arith.minimumf %15, %14 : vector<16x512xf32>
    %17 = arith.mulf %16, %16 : vector<16x512xf32>
    %cst_8 = arith.constant 1.000000e+00 : f32
    %18 = vector.broadcast %cst_8 : f32 to vector<16x512xf32>
    %19 = arith.subf %18, %17 : vector<16x512xf32>
    %cst_9 = arith.constant 0.000000e+00 : f32
    %20 = vector.broadcast %cst_9 : f32 to vector<16x512xf32>
    %21 = arith.maximumf %19, %20 : vector<16x512xf32>
    %22 = math.sqrt %21 : vector<16x512xf32>
    %cst_10 = arith.constant 6.400000e+01 : f32
    %23 = vector.broadcast %cst_10 : f32 to vector<16x512xf32>
    %24 = arith.mulf %16, %23 : vector<16x512xf32>
    %cst_11 = arith.constant 56.1652832 : f32
    %25 = vector.broadcast %cst_11 : f32 to vector<16x512xf32>
    %26 = arith.mulf %16, %25 : vector<16x512xf32>
    %cst_12 = arith.constant 30.6832352 : f32
    %27 = vector.broadcast %cst_12 : f32 to vector<16x512xf32>
    %28 = arith.mulf %22, %27 : vector<16x512xf32>
    %29 = arith.subf %26, %28 : vector<16x512xf32>
    %cst_13 = arith.constant -0.87758255 : f32
    %30 = vector.broadcast %cst_13 : f32 to vector<16x512xf32>
    %31 = arith.subf %16, %30 : vector<16x512xf32>
    %cst_14 = arith.constant 0.000000e+00 : f32
    %32 = vector.broadcast %cst_14 : f32 to vector<16x512xf32>
    %33 = arith.cmpf ole, %31, %32 : vector<16x512xf32>
    %cst_15 = arith.constant 15.3416176 : f32
    %34 = vector.broadcast %cst_15 : f32 to vector<16x512xf32>
    %35 = arith.subf %24, %34 : vector<16x512xf32>
    %36 = arith.select %33, %35, %29 : vector<16x512xi1>, vector<16x512xf32>
    %c0_16 = arith.constant 0 : index
    %c0_17 = arith.constant 0 : index
    %37 = vector.load %arg4[%c0_16, %c0_17] : memref<16x1xi32, #tpu.memory_space<vmem>>, vector<16x1xi32>
    %c512_i32 = arith.constant 512 : i32
    %38 = arith.muli %arg0, %c512_i32 : i32
    %39 = vector.broadcast %38 : i32 to vector<16x1xi32>
    %40 = arith.subi %37, %39 : vector<16x1xi32>
    %41 = tpu.iota {dimensions = array<i32: 1>} : vector<16x512xi32>
    %42 = vector.broadcast %40 : vector<16x1xi32> to vector<16x512xi32>
    %43 = arith.cmpi eq, %41, %42 : vector<16x512xi32>
    %44 = arith.select %43, %36, %24 : vector<16x512xi1>, vector<16x512xf32>
    %c0_18 = arith.constant 0 : index
    %c0_19 = arith.constant 0 : index
    %45 = vector.load %arg5[%c0_18, %c0_19] : memref<16x512xf32, #tpu.memory_space<vmem>>, vector<16x512xf32>
    tpu.vector_store %arg5[%c0_18, %c0_19], %44 {strides = array<i32>} : memref<16x512xf32, #tpu.memory_space<vmem>>, vector<16x512xf32>,
    return
  }
  func.func @transform_0(%arg0: i32, %arg1: i32) -> (i32, i32) {
    %c0_i32 = arith.constant 0 : i32
    %c0_i32_0 = arith.constant 0 : i32
    return %arg1, %c0_i32 : i32, i32
  }
  func.func @transform_1(%arg0: i32, %arg1: i32) -> (i32, i32) {
    %c0_i32 = arith.constant 0 : i32
    %c0_i32_0 = arith.constant 0 : i32
    return %c0_i32, %arg0 : i32, i32
  }
  func.func @transform_2(%arg0: i32, %arg1: i32) -> (i32, i32) {
    %c0_i32 = arith.constant 0 : i32
    %c0_i32_0 = arith.constant 0 : i32
    return %arg1, %c0_i32 : i32, i32
  }
  func.func @transform_3(%arg0: i32, %arg1: i32) -> (i32, i32) {
    %c0_i32 = arith.constant 0 : i32
    return %arg1, %arg0 : i32, i32
  }
}

</mosaic_0001>

<bundles_post_ra>
// kernel: tpu_custom_call.1
= control target key start
LH: loop header
LB: loop body
LE: loop exit
PB: predicated region body
PF: predicated region fallthrough
CT: control target
= control target key end

     0   :  { %8 = vsyncpa [#allocation3], 0  ;;  %s945_s0 = inlined_call_operand.vmem [shape: f32[16,64], index: 0, kind: input, shape index: {}]   ;;  %s946_s1 = inlined_call_operand.hbm [shape: f32[64,512], index: 1, kind: input, shape index: {}]   ;;  %s947_s2 = inlined_call_operand.vmem [shape: s32[16,1], index: 2, kind: input, shape index: {}]   ;;  %s948_s3 = inlined_call_operand.hbm [shape: f32[16,512], index: 3, kind: output, shape index: {}]  }
   0x1   :  { %9 = vsyncpa [#allocation4], 0  ;;  %s685_s12 = smov [#allocation2]   ;;  %s637_s16 = scalar_lea.hbm %s946_s1, 4096 }
   0x2   :  { %s17_s13 = sshll.u32 %s685_s12, 4  ;;  %p638_p0 = scmp.ne.s32.totalorder %s946_s1, %s637_s16  ;;  %s18_s13 = int_to_ptr.vmem [resolvable:$true] %s17_s13 }
   0x3   :  { %p641_p1 = scmp.lt.u32.totalorder %s637_s16, %s946_s1 }
   0x5   :  { %p643_p2 = pnand %p641_p1, %p638_p0 }
   0x7   :  { %646 = shalt.err (!%p643_p2)
}
   0x8   :  { %s647_s21 = scalar_lea.vmem %s18_s13, 4096  ;;  %p652_p4 = scmp.lt.s32.totalorder %s18_s13, %s18_s13 }
   0x9   :  { %p648_p3 = scmp.ne.s32.totalorder %s18_s13, %s647_s21  ;;  %p653_p5 = scmp.lt.s32.totalorder %s647_s21, %s647_s21 }
   0xb   :  { %p654_p6 = por %p653_p5, %p652_p4 }
   0xd   :  { %p655_p7 = pnand %p654_p6, %p648_p3 }
   0xf   :  { %658 = shalt.err (!%p655_p7)
}
  0x10   :  { %s686_s22 = smov 512   ;;  %s687_s23 = smov 32  }
  0x11   :  { %23 = dma.hbm_to_vmem [thread:$0]  %s946_s1, 4096, %s18_s13, [#allocation3], %s686_s22, %s686_s22, %s687_s23  }
  0x12   :  { %681 = dma.done.wait [#allocation3], 4096  }
  0x13   :  { %682 = vsyncadd [#allocation3], 4294963200  ;;  %v688_v0 = vmov 0.0   ;;  %v689_v1 = vmov 0   ;;  %v30_v2 = vld [vmem:[#allocation2 + $0x8] sm:$0xff]  ;;  %v32_v4 = vld [vmem:[#allocation2 + $0x18] sm:$0xff] }
  0x14   :  { %230 = vmatprep.mubr.f32.mxu0 %v688_v0  ;;  %307 = vmatprep.mubr.f32.mxu1 %v688_v0  ;;  %v34_v3 = vld [vmem:[#allocation2 + $0x28] sm:$0xff]  ;;  %v62_v5 = vmul.f32 %v30_v2, %v30_v2  ;;  %v36_v8 = vld [vmem:[#allocation2 + $0x38] sm:$0xff]  ;;  %v64_v9 = vmul.f32 %v32_v4, %v32_v4  ;;  %v29_v10 = vld [vmem:[#allocation2] sm:$0xff]  ;;  %vm159_vm0 = vcmask 523264  }
  0x15   :  { %612 = vset.pattern.permute.xlu0 %v689_v1  ;;  %v66_v6 = vmul.f32 %v34_v3, %v34_v3  ;;  %v574_v7 = vpack.c.bf16 %v34_v3, %v30_v2  ;;  %v33_v11 = vld [vmem:[#allocation2 + $0x20] sm:$0xff]  ;;  %v68_v12 = vmul.f32 %v36_v8, %v36_v8  ;;  %v590_v13 = vpack.c.bf16 %v36_v8, %v32_v4  ;;  %v31_v16 = vld [vmem:[#allocation2 + $0x10] sm:$0xff]  ;;  %v38_v18 = vld [vmem:[#allocation2 + $0x48] sm:$0xff] }
  0x16   :  { %v61_v14 = vmul.f32 %v29_v10, %v29_v10  ;;  %v65_v15 = vmul.f32 %v33_v11, %v33_v11  ;;  %v35_v17 = vld [vmem:[#allocation2 + $0x30] sm:$0xff]  ;;  %v576_v20 = vpack.c.bf16 %v33_v11, %v29_v10  ;;  %v63_v21 = vmul.f32 %v31_v16, %v31_v16  ;;  %v42_v23 = vld [vmem:[#allocation2 + $0x68] sm:$0xff]  ;;  %v40_v24 = vld [vmem:[#allocation2 + $0x58] sm:$0xff] }
  0x17   :  { %v106_v19 = vadd.f32 %v66_v6, %v62_v5  ;;  %575 = vmatprep.subr.bf16.mxu0 %v574_v7  ;;  %v67_v22 = vmul.f32 %v35_v17, %v35_v17  ;;  %v44_v25 = vld [vmem:[#allocation2 + $0x78] sm:$0xff]  ;;  %v132_v26 = vadd.f32 %v68_v12, %v64_v9  ;;  %591 = vmatprep.subr.bf16.mxu1 %v590_v13  ;;  %v37_v30 = vld [vmem:[#allocation2 + $0x40] sm:$0xff]  ;;  %v39_v36 = vld [vmem:[#allocation2 + $0x50] sm:$0xff] }
  0x18   :  { %v93_v27 = vadd.f32 %v65_v15, %v61_v14  ;;  %v592_v28 = vpack.c.bf16 %v35_v17, %v31_v16  ;;  %v70_v29 = vmul.f32 %v38_v18, %v38_v18  ;;  %v41_v31 = vld [vmem:[#allocation2 + $0x60] sm:$0xff]  ;;  %577 = vmatpush1.bf16.msra.mxu0 %v576_v20  ;;  %v74_v33 = vmul.f32 %v42_v23, %v42_v23  ;;  %v43_v37 = vld [vmem:[#allocation2 + $0x70] sm:$0xff]  ;;  %v46_v46 = vld [vmem:[#allocation2 + $0x88] sm:$0xff] }
  0x19   :  { %v119_v32 = vadd.f32 %v67_v22, %v63_v21  ;;  %v578_v34 = vpack.c.bf16 %v42_v23, %v38_v18  ;;  %v72_v35 = vmul.f32 %v40_v24, %v40_v24  ;;  %v76_v39 = vmul.f32 %v44_v25, %v44_v25  ;;  %v50_v47 = vld [vmem:[#allocation2 + $0xa8] sm:$0xff]  ;;  %v48_v52 = vld [vmem:[#allocation2 + $0x98] sm:$0xff]  ;;  %v45_v58 = vld [vmem:[#allocation2 + $0x80] sm:$0xff] }
  0x1a   :  { %593 = vmatpush1.bf16.msra.mxu1 %v592_v28  ;;  %v107_v38 = vadd.f32 %v106_v19, %v70_v29  ;;  %v594_v40 = vpack.c.bf16 %v44_v25, %v40_v24  ;;  %v69_v41 = vmul.f32 %v37_v30, %v37_v30  ;;  %v73_v43 = vmul.f32 %v41_v31, %v41_v31  ;;  %v52_v53 = vld [vmem:[#allocation2 + $0xb8] sm:$0xff]  ;;  %v49_v59 = vld [vmem:[#allocation2 + $0xa0] sm:$0xff]  ;;  %v47_v1 = vld [vmem:[#allocation2 + $0x90] sm:$0xff] }
  0x1b   :  { %579 = vmatprep.subr.bf16.mxu0 %v578_v34  ;;  %v133_v42 = vadd.f32 %v132_v26, %v72_v35  ;;  %v580_v44 = vpack.c.bf16 %v41_v31, %v37_v30  ;;  %v71_v45 = vmul.f32 %v39_v36, %v39_v36  ;;  %v75_v50 = vmul.f32 %v43_v37, %v43_v37  ;;  %v51_v2 = vld [vmem:[#allocation2 + $0xb0] sm:$0xff]  ;;  %v54_v11 = vld [vmem:[#allocation2 + $0xc8] sm:$0xff]  ;;  %v56_v17 = vld [vmem:[#allocation2 + $0xd8] sm:$0xff] }
  0x1c   :  { %v108_v48 = vadd.f32 %v107_v38, %v74_v33  ;;  %595 = vmatprep.subr.bf16.mxu1 %v594_v40  ;;  %v94_v49 = vadd.f32 %v93_v27, %v69_v41  ;;  %v596_v51 = vpack.c.bf16 %v43_v37, %v39_v36  ;;  %v78_v56 = vmul.f32 %v46_v46, %v46_v46  ;;  %v58_v12 = vld [vmem:[#allocation2 + $0xe8] sm:$0xff]  ;;  %v60_v18 = vld [vmem:[#allocation2 + $0xf8] sm:$0xff]  ;;  %v488_v19 = vld [vmem:[%s947_s2] sm:$0xff] }
  0x1d   :  { %v134_v54 = vadd.f32 %v133_v42, %v76_v39  ;;  %581 = vmatpush1.bf16.msra.mxu0 %v580_v44  ;;  %v120_v55 = vadd.f32 %v119_v32, %v71_v45  ;;  %v82_v57 = vmul.f32 %v50_v47, %v50_v47  ;;  %v582_v61 = vpack.c.bf16 %v50_v47, %v46_v46  ;;  %v53_v24 = vld [vmem:[#allocation2 + $0xc0] sm:$0xff]  ;;  %v55_v30 = vld [vmem:[#allocation2 + $0xd0] sm:$0xff]  ;;  %v489_v40 = vld [vmem:[%s947_s2 + $0x8] sm:$0xff] }
  0x1e   :  { %v95_v60 = vadd.f32 %v94_v49, %v73_v43  ;;  %597 = vmatpush1.bf16.msra.mxu1 %v596_v51  ;;  %v80_v62 = vmul.f32 %v48_v52, %v48_v52  ;;  %v84_v63 = vmul.f32 %v52_v53, %v52_v53  ;;  %v109_v4 = vadd.f32 %v108_v48, %v78_v56  ;;  %v57_v25 = vld [vmem:[#allocation2 + $0xe0] sm:$0xff]  ;;  %v59_v31 = vld [vmem:[#allocation2 + $0xf0] sm:$0xff] }
  0x1f   :  { %v121_v3 = vadd.f32 %v120_v55, %v75_v50  ;;  %v598_v5 = vpack.c.bf16 %v52_v53, %v48_v52  ;;  %v77_v6 = vmul.f32 %v45_v58, %v45_v58  ;;  %583 = vmatprep.subr.bf16.mxu0 %v582_v61  ;;  %v81_v8 = vmul.f32 %v49_v59, %v49_v59  ;;  %v157_v47 = vld [vmem:[%s945_s0] sm:$0xff]  ;;  %v158_v50 = vld [vmem:[%s945_s0 + $0x8] sm:$0xff]  ;;  %s690_s0 = smov [#allocation5]  }
  0x20   :  { %v135_v7 = vadd.f32 %v134_v54, %v80_v62  ;;  %v584_v9 = vpack.c.bf16 %v49_v59, %v45_v58  ;;  %v79_v10 = vmul.f32 %v47_v1, %v47_v1  ;;  %v110_v13 = vadd.f32 %v109_v4, %v82_v57  ;;  %500 = vperm.xlu0 %612, %v488_v19   ;;  %s534_s5 = sshll.u32 %s690_s0, 4  ;;  %s535_s5 = int_to_ptr.vmem [resolvable:$true] %s534_s5 }
  0x21   :  { %599 = vmatprep.subr.bf16.mxu1 %v598_v5  ;;  %v96_v14 = vadd.f32 %v95_v60, %v77_v6  ;;  %v83_v15 = vmul.f32 %v51_v2, %v51_v2  ;;  %v600_v16 = vpack.c.bf16 %v51_v2, %v47_v1  ;;  %v86_v22 = vmul.f32 %v54_v11, %v54_v11  ;;  %s659_s6 = scalar_lea.vmem %s535_s5, 1024  ;;  %p664_p9 = scmp.lt.s32.totalorder %s535_s5, %s535_s5 }
  0x22   :  { %v136_v20 = vadd.f32 %v135_v7, %v84_v63  ;;  %585 = vmatpush1.bf16.msra.mxu0 %v584_v9  ;;  %v122_v21 = vadd.f32 %v121_v3, %v79_v10  ;;  %v90_v23 = vmul.f32 %v58_v12, %v58_v12  ;;  %v586_v27 = vpack.c.bf16 %v58_v12, %v54_v11  ;;  %p660_p8 = scmp.ne.s32.totalorder %s535_s5, %s659_s6  ;;  %p665_p10 = scmp.lt.s32.totalorder %s659_s6, %s659_s6 }
  0x23   :  { %v97_v26 = vadd.f32 %v96_v14, %v81_v8  ;;  %601 = vmatpush1.bf16.msra.mxu1 %v600_v16  ;;  %v88_v28 = vmul.f32 %v56_v17, %v56_v17  ;;  %v92_v29 = vmul.f32 %v60_v18, %v60_v18  ;;  %v111_v33 = vadd.f32 %v110_v13, %v86_v22 }
  0x24   :  { %v123_v32 = vadd.f32 %v122_v21, %v83_v15  ;;  %v602_v34 = vpack.c.bf16 %v60_v18, %v56_v17  ;;  %v85_v35 = vmul.f32 %v53_v24, %v53_v24  ;;  %587 = vmatprep.subr.bf16.mxu0 %v586_v27  ;;  %v89_v37 = vmul.f32 %v57_v25, %v57_v25  ;;  %p666_p11 = por %p665_p10, %p664_p9 }
  0x25   :  { %v137_v36 = vadd.f32 %v136_v20, %v88_v28  ;;  %v588_v38 = vpack.c.bf16 %v57_v25, %v53_v24  ;;  %v87_v39 = vmul.f32 %v55_v30, %v55_v30  ;;  %v112_v41 = vadd.f32 %v111_v33, %v90_v23  ;;  %503 = vperm.xlu0 %612, %v489_v40  }
  0x26   :  { %603 = vmatprep.subr.bf16.mxu1 %v602_v34  ;;  %v98_v42 = vadd.f32 %v97_v26, %v85_v35  ;;  %v91_v43 = vmul.f32 %v59_v31, %v59_v31  ;;  %v604_v44 = vpack.c.bf16 %v59_v31, %v55_v30  ;;  %p667_p12 = pnand %p666_p11, %p660_p8 }
  0x27   :  { %v138_v45 = vadd.f32 %v137_v36, %v92_v29  ;;  %589 = vmatpush1.bf16.msra.mxu0 %v588_v38  ;;  %v124_v46 = vadd.f32 %v123_v32, %v87_v39  ;;  %v113_v53 = vrot.slane %v112_v41, 4  ;;  %v494_v38 = vlaneseq }
  0x28   :  { %v99_v48 = vadd.f32 %v98_v42, %v89_v37  ;;  %605 = vmatpush1.bf16.msra.mxu1 %v604_v44 }
  0x29   :  { %v125_v49 = vadd.f32 %v124_v46, %v91_v43  ;;  %v139_v54 = vrot.slane %v138_v45, 4  ;;  %v114_v57 = vadd.f32 %v113_v53, %v112_v41 }
  0x2a   :  { %546 = vmatmul.mubr.msk.f32.vlgmr.msra.gmra.mrb[0].mxu0 %vm159_vm0, %v157_v47  ;;  %v100_v51 = vrot.slane %v99_v48, 4 }
  0x2b   :  { %548 = vmatmul.mubr.msk.f32.vlgmr.msra.gmra.mrb[0].mxu1 %vm159_vm0, %v157_v47  ;;  %236 = vmatprep.mubr.f32.mxu0 %v688_v0  ;;  %v126_v52 = vrot.slane %v125_v49, 4  ;;  %v140_v58 = vadd.f32 %v139_v54, %v138_v45  ;;  %v115_v61 = vrot.slane %v114_v57, 2  ;;  %v746_v45 = vand.u32 127, %v494_v38 }
  0x2c   :  { %313 = vmatprep.mubr.f32.mxu1 %v688_v0  ;;  %v101_v55 = vadd.f32 %v100_v51, %v99_v48 }
  0x2d   :  { %v127_v56 = vadd.f32 %v126_v52, %v125_v49  ;;  %v141_v62 = vrot.slane %v140_v58, 2  ;;  %v116_v2 = vadd.f32 %v115_v61, %v114_v57  ;;  %v759_v51 = vadd.s32 128, %v746_v45 }
  0x2e   :  { %547 = vmatmul.mubr.msk.f32.gmra.mrb[2].mxu0 %vm159_vm0, %v158_v50  ;;  %v102_v59 = vrot.slane %v101_v55, 2  ;;  %v762_v52 = vadd.s32 256, %v746_v45 }
  0x2f   :  { %549 = vmatmul.mubr.msk.f32.gmra.mrb[2].mxu1 %vm159_vm0, %v158_v50  ;;  %v128_v60 = vrot.slane %v127_v56, 2  ;;  %v142_v3 = vadd.f32 %v141_v62, %v140_v58  ;;  %v117_v5 = vrot.slane %v116_v2, 1 }
  0x30   :  { %v103_v63 = vadd.f32 %v102_v59, %v101_v55 }
  0x31   :  { %v129_v1 = vadd.f32 %v128_v60, %v127_v56  ;;  %v143_v6 = vrot.slane %v142_v3, 1  ;;  %v118_v9 = vadd.f32 %v117_v5, %v116_v2  ;;  %v769_v56 = vadd.s32 384, %v746_v45 }
  0x32   :  { %v104_v4 = vrot.slane %v103_v63, 1 }
  0x33   :  { %v130_v0 = vrot.slane %v129_v1, 1  ;;  %v144_v10 = vadd.f32 %v143_v6, %v142_v3  ;;  %vm146_vm3 = vcmp.gt.f32.partialorder %v118_v9, 0.0 }
  0x34   :  { %v105_v7 = vadd.f32 %v104_v4, %v103_v63 }
  0x35   :  { %v131_v8 = vadd.f32 %v130_v0, %v129_v1  ;;  %vm148_vm4 = vcmp.gt.f32.partialorder %v144_v10, 0.0 }
  0x36   :  { %613 = vrsqrt.f32 %v105_v7  ;;  %vm145_vm1 = vcmp.gt.f32.partialorder %v105_v7, 0.0 }
  0x37   :  { %615 = vrsqrt.f32 %v131_v8  ;;  %vm147_vm2 = vcmp.gt.f32.partialorder %v131_v8, 0.0 }
  0x38   :  { %617 = vrsqrt.f32 %v118_v9 }
  0x39   :  { %619 = vrsqrt.f32 %v144_v10 }
  0x40   :  { %v614_v11 = vpop.eup %613 }
  0x41   :  { %v616_v12 = vpop.eup %615  ;;  %v153_v15 = vsel %vm145_vm1, %v614_v11, 0.0 }
  0x42   :  { %v618_v13 = vpop.eup %617  ;;  %v155_v16 = vsel %vm147_vm2, %v616_v12, 0.0 }
  0x43   :  { %v620_v14 = vpop.eup %619  ;;  %v154_v17 = vsel %vm146_vm3, %v618_v13, 0.0 }
  0x44   :  { %v156_v19 = vsel %vm148_vm4, %v620_v14, 0.0 }
  0xfd   :  { %v232_v18 = vpop.f32.mrb[0].mxu0 }
  0xfe   :  { %v320_v20 = vmul.f32 %v232_v18, %v153_v15  ;;  %v309_v21 = vpop.f32.mrb[0].mxu1  ;;  %v234_v22 = vpop.f32.mrb[1].mxu0 }
  0xff   :  { %v322_v23 = vmul.f32 %v309_v21, %v155_v16  ;;  %v321_v24 = vmul.f32 %v234_v22, %v154_v17  ;;  %v311_v25 = vpop.f32.mrb[1].mxu1  ;;  %v816_v21 = vpop.permute.xlu0 %500 }
 0x100   :  { %v550_v26 = vclamps-f32 %v320_v20, 1.0  ;;  %v323_v27 = vmul.f32 %v311_v25, %v156_v19  ;;  %vm505_vm11 = vcmp.eq.s32.totalorder %v746_v45, %v816_v21  ;;  %vm506_vm12 = vcmp.eq.s32.totalorder %v759_v51, %v816_v21 }
 0x101   :  { %v552_v28 = vclamps-f32 %v322_v23, 1.0  ;;  %v551_v29 = vclamps-f32 %v321_v24, 1.0  ;;  %v238_v30 = vpop.f32.mrb[2].mxu0  ;;  %vm507_vm13 = vcmp.eq.s32.totalorder %v762_v52, %v816_v21  ;;  %vm508_vm1 = vcmp.eq.s32.totalorder %v769_v56, %v816_v21 }
 0x102   :  { %v344_v31 = vmul.f32 %v550_v26, %v550_v26  ;;  %v315_v32 = vpop.f32.mrb[2].mxu1  ;;  %v240_v34 = vpop.f32.mrb[3].mxu0  ;;  %v744_v43 = vclamps-f32 %v323_v27, 1.0  ;;  %v324_v44 = vmul.f32 %v238_v30, %v153_v15  ;;  %v755_v50 = vmul.f32 64.0, %v550_v26 }
 0x103   :  { %v346_v33 = vmul.f32 %v552_v28, %v552_v28  ;;  %v345_v36 = vmul.f32 %v551_v29, %v551_v29  ;;  %v317_v37 = vpop.f32.mrb[3].mxu1  ;;  %v326_v49 = vmul.f32 %v315_v32, %v155_v16  ;;  %v764_v53 = vmul.f32 64.0, %v552_v28 }
 0x104   :  { %v352_v35 = vsub.f32 1.0, %v344_v31  ;;  %v347_v47 = vmul.f32 %v744_v43, %v744_v43  ;;  %v753_v48 = vclamps-f32 %v324_v44, 1.0  ;;  %v771_v57 = vmul.f32 56.165283, %v550_v26 }
 0x105   :  { %v354_v39 = vsub.f32 1.0, %v346_v33  ;;  %v353_v41 = vsub.f32 1.0, %v345_v36  ;;  %v773_v58 = vadd.f32 0.87758255, %v550_v26  ;;  %v775_v59 = vmul.f32 64.0, %v551_v29 }
 0x106   :  { %v360_v40 = vmax.f32 %v352_v35, 0.0  ;;  %v355_v54 = vsub.f32 1.0, %v347_v47  ;;  %v348_v55 = vmul.f32 %v753_v48, %v753_v48  ;;  %v777_v60 = vclamps-f32 %v326_v49, 1.0 }
 0x107   :  { %v742_v42 = vmax.f32 %v354_v39, 0.0  ;;  %v749_v46 = vmax.f32 %v353_v41, 0.0  ;;  %v325_v63 = vmul.f32 %v240_v34, %v154_v17  ;;  %v327_v1 = vmul.f32 %v317_v37, %v156_v19 }
 0x108   :  { %621 = vrsqrt.f32 %v360_v40  ;;  %v779_v61 = vmax.f32 %v355_v54, 0.0  ;;  %v356_v62 = vsub.f32 1.0, %v348_v55  ;;  %v782_v2 = vadd.f32 -15.341618, %v755_v50 }
 0x109   :  { %623 = vrsqrt.f32 %v742_v42  ;;  %v784_v3 = vmul.f32 56.165283, %v552_v28  ;;  %v786_v4 = vadd.f32 0.87758255, %v552_v28  ;;  %v350_v0 = vmul.f32 %v777_v60, %v777_v60 }
 0x10a   :  { %625 = vrsqrt.f32 %v749_v46  ;;  %v791_v5 = vadd.f32 -15.341618, %v764_v53  ;;  %v793_v6 = vmul.f32 56.165283, %v551_v29  ;;  %v795_v7 = vadd.f32 0.87758255, %v551_v29 }
 0x10b   :  { %627 = vrsqrt.f32 %v779_v61  ;;  %vm370_vm5 = vcmp.eq.f32.partialorder %v360_v40, inf  ;;  %v799_v9 = vadd.f32 -15.341618, %v775_v59  ;;  %v801_v10 = vmax.f32 %v356_v62, 0.0 }
 0x10c   :  { %v358_v11 = vsub.f32 1.0, %v350_v0  ;;  %vm372_vm6 = vcmp.eq.f32.partialorder %v360_v40, 0.0  ;;  %v373_v14 = vand.u32 2147483648, %v360_v40  ;;  %v803_v15 = vclamps-f32 %v325_v63, 1.0 }
 0x10d   :  { %vm384_vm7 = vcmp.eq.f32.partialorder %v742_v42, inf  ;;  %vm386_vm8 = vcmp.eq.f32.partialorder %v742_v42, 0.0  ;;  %629 = vrsqrt.f32 %v801_v10  ;;  %v387_v18 = vand.u32 2147483648, %v742_v42 }
 0x10e   :  { %vm466_vm9 = vcmp.le.f32.partialorder %v786_v4, 0.0  ;;  %v812_v19 = vmul.f32 64.0, %v744_v43  ;;  %v814_v20 = vmax.f32 %v358_v11, 0.0  ;;  %vm465_vm10 = vcmp.le.f32.partialorder %v795_v7, 0.0 }
 0x10f   :  { %v821_v25 = vadd.f32 0.87758255, %v744_v43  ;;  %v349_v26 = vmul.f32 %v803_v15, %v803_v15  ;;  %vm464_vm14 = vcmp.le.f32.partialorder %v773_v58, 0.0  ;;  %v836_v29 = vclamps-f32 %v327_v1, 1.0 }
 0x110   :  { %631 = vrsqrt.f32 %v814_v20  ;;  %vm377_vm15 = vcmp.eq.f32.partialorder %v749_v46, inf  ;;  %v380_v32 = vand.u32 2147483648, %v749_v46  ;;  %vm379_vm0 = vcmp.eq.f32.partialorder %v749_v46, 0.0 }
 0x111   :  { %v435_v34 = vmul.f32 56.165283, %v744_v43  ;;  %v357_v35 = vsub.f32 1.0, %v349_v26  ;;  %v569_v38 = vadd.f32 -15.341618, %v812_v19  ;;  %v846_v39 = vmul.f32 64.0, %v753_v48 }
 0x112   :  { %v622_v8 = vpop.eup %621  ;;  %vm467_vm2 = vcmp.le.f32.partialorder %v821_v25, 0.0  ;;  %v351_v43 = vmul.f32 %v836_v29, %v836_v29  ;;  %vm391_vm3 = vcmp.eq.f32.partialorder %v779_v61, inf  ;;  %v562_v49 = vadd.f32 0.87758255, %v753_v48 }
 0x113   :  { %v624_v12 = vpop.eup %623  ;;  %v369_v13 = vmul.f32 %v622_v8, %v360_v40  ;;  %v852_v44 = vmax.f32 %v357_v35, 0.0  ;;  %vm393_vm4 = vcmp.eq.f32.partialorder %v779_v61, 0.0  ;;  %v394_v55 = vand.u32 2147483648, %v779_v61 }
 0x114   :  { %v383_v16 = vmul.f32 %v624_v12, %v742_v42  ;;  %v626_v22 = vpop.eup %625  ;;  %v359_v1 = vsub.f32 1.0, %v351_v43  ;;  %v401_v8 = vand.u32 2147483648, %v801_v10  ;;  %v438_v25 = vmul.f32 56.165283, %v777_v60 }
 0x115   :  { %v371_v17 = vsel %vm370_vm5, %v360_v40, %v369_v13  ;;  %v376_v28 = vmul.f32 %v626_v22, %v749_v46  ;;  %v628_v40 = vpop.eup %627  ;;  %633 = vrsqrt.f32 %v852_v44  ;;  %vm398_vm5 = vcmp.eq.f32.partialorder %v801_v10, inf }
 0x116   :  { %v374_v23 = vsel %vm372_vm6, %v373_v14, %v371_v17  ;;  %v385_v24 = vsel %vm384_vm7, %v742_v42, %v383_v16  ;;  %v436_v42 = vmul.f32 56.165283, %v753_v48  ;;  %v390_v47 = vmul.f32 %v628_v40, %v779_v61  ;;  %v504_v17 = vpop.permute.xlu0 %503 }
 0x117   :  { %v388_v27 = vsel %vm386_vm8, %v387_v18, %v385_v24  ;;  %v440_v30 = vmul.f32 30.683235, %v374_v23  ;;  %v378_v33 = vsel %vm377_vm15, %v749_v46, %v376_v28  ;;  %v630_v62 = vpop.eup %629  ;;  %vm400_vm6 = vcmp.eq.f32.partialorder %v801_v10, 0.0 }
 0x118   :  { %v442_v31 = vmul.f32 30.683235, %v388_v27  ;;  %v381_v37 = vsel %vm379_vm0, %v380_v32, %v378_v33  ;;  %v397_v0 = vmul.f32 %v630_v62, %v801_v10  ;;  %v875_v11 = vmax.f32 %v359_v1, 0.0 }
 0x119   :  { %v441_v41 = vmul.f32 30.683235, %v381_v37  ;;  %v448_v46 = vsub.f32 %v771_v57, %v440_v30  ;;  %v392_v57 = vsel %vm391_vm3, %v779_v61, %v390_v47  ;;  %vm412_vm7 = vcmp.eq.f32.partialorder %v814_v20, inf }
 0x11a   :  { %v450_v36 = vsub.f32 %v784_v3, %v442_v31  ;;  %v395_v3 = vsel %vm393_vm4, %v394_v55, %v392_v57  ;;  %v632_v4 = vpop.eup %631  ;;  %635 = vrsqrt.f32 %v875_v11  ;;  %vm414_vm8 = vcmp.eq.f32.partialorder %v814_v20, 0.0 }
 0x11b   :  { %v449_v54 = vsub.f32 %v793_v6, %v441_v41  ;;  %v443_v6 = vmul.f32 30.683235, %v395_v3  ;;  %v480_v61 = vsel %vm464_vm14, %v782_v2, %v448_v46  ;;  %v411_v13 = vmul.f32 %v632_v4, %v814_v20 }
 0x11c   :  { %v482_v63 = vsel %vm466_vm9, %v791_v5, %v450_v36  ;;  %v399_v5 = vsel %vm398_vm5, %v801_v10, %v397_v0  ;;  %v513_v7 = vsel %vm505_vm11, %v480_v61, %v755_v50  ;;  %v570_v10 = vadd.f32 -15.341618, %v846_v39 }
 0x11d   :  { %v481_v48 = vsel %vm465_vm10, %v799_v9, %v449_v54  ;;  %v515_v12 = vsel %vm507_vm13, %v482_v63, %v764_v53  ;;  %v451_v58 = vsub.f32 %v435_v34, %v443_v6  ;;  %v402_v2 = vsel %vm400_vm6, %v401_v8, %v399_v5  ;;  %521 = vst [vmem:[#allocation5] sm:$0xff] %v513_v7 }
 0x11e   :  { %v514_v9 = vsel %vm506_vm12, %v481_v48, %v775_v59  ;;  %523 = vst [vmem:[#allocation5 + $0x10] sm:$0xff] %v515_v12  ;;  %v444_v50 = vmul.f32 30.683235, %v402_v2  ;;  %v415_v59 = vand.u32 2147483648, %v814_v20  ;;  %v413_v53 = vsel %vm412_vm7, %v814_v20, %v411_v13 }
 0x11f   :  { %522 = vst [vmem:[#allocation5 + $0x8] sm:$0xff] %v514_v9  ;;  %v483_v14 = vsel %vm467_vm2, %v569_v38, %v451_v58  ;;  %v430_v16 = vmul.f32 64.0, %v777_v60  ;;  %v564_v23 = vadd.f32 0.87758255, %v777_v60  ;;  %vm468_vm9 = vcmp.le.f32.partialorder %v562_v49, 0.0  ;;  %v634_v27 = vpop.eup %633 }
 0x120   :  { %v452_v18 = vsub.f32 %v436_v42, %v444_v50  ;;  %v416_v22 = vsel %vm414_vm8, %v415_v59, %v413_v53  ;;  %v516_v24 = vsel %vm508_vm1, %v483_v14, %v812_v19  ;;  %vm509_vm10 = vcmp.eq.s32.totalorder %v746_v45, %v504_v17 }
 0x121   :  { %v446_v26 = vmul.f32 30.683235, %v416_v22  ;;  %524 = vst [vmem:[#allocation5 + $0x18] sm:$0xff] %v516_v24  ;;  %v572_v30 = vadd.f32 -15.341618, %v430_v16  ;;  %v404_v31 = vmul.f32 %v634_v27, %v852_v44  ;;  %vm470_vm11 = vcmp.le.f32.partialorder %v564_v23, 0.0 }
 0x122   :  { %v484_v28 = vsel %vm468_vm9, %v570_v10, %v452_v18  ;;  %vm405_vm12 = vcmp.eq.f32.partialorder %v852_v44, inf  ;;  %v408_v19 = vand.u32 2147483648, %v852_v44  ;;  %vm511_vm13 = vcmp.eq.s32.totalorder %v762_v52, %v504_v17 }
 0x123   :  { %v454_v20 = vsub.f32 %v438_v25, %v446_v26  ;;  %v517_v32 = vsel %vm509_vm10, %v484_v28, %v846_v39  ;;  %v406_v60 = vsel %vm405_vm12, %v852_v44, %v404_v31  ;;  %vm407_vm14 = vcmp.eq.f32.partialorder %v852_v44, 0.0 }
 0x124   :  { %525 = vst [vmem:[#allocation5 + $0x20] sm:$0xff] %v517_v32  ;;  %v429_v45 = vmul.f32 64.0, %v803_v15  ;;  %v409_v33 = vsel %vm407_vm14, %v408_v19, %v406_v60  ;;  %v563_v34 = vadd.f32 0.87758255, %v803_v15  ;;  %v636_v36 = vpop.eup %635  ;;  %v437_v37 = vmul.f32 56.165283, %v803_v15 }
 0x125   :  { %v486_v21 = vsel %vm470_vm11, %v572_v30, %v454_v20  ;;  %v445_v38 = vmul.f32 30.683235, %v409_v33  ;;  %v418_v39 = vmul.f32 %v636_v36, %v875_v11  ;;  %vm419_vm15 = vcmp.eq.f32.partialorder %v875_v11, inf }
 0x126   :  { %v519_v35 = vsel %vm511_vm13, %v486_v21, %v430_v16  ;;  %v571_v40 = vadd.f32 -15.341618, %v429_v45  ;;  %v422_v41 = vand.u32 2147483648, %v875_v11  ;;  %vm469_vm0 = vcmp.le.f32.partialorder %v563_v34, 0.0 }
 0x127   :  { %527 = vst [vmem:[#allocation5 + $0x30] sm:$0xff] %v519_v35  ;;  %v453_v52 = vsub.f32 %v437_v37, %v445_v38  ;;  %v420_v42 = vsel %vm419_vm15, %v875_v11, %v418_v39  ;;  %vm421_vm1 = vcmp.eq.f32.partialorder %v875_v11, 0.0  ;;  %v431_v44 = vmul.f32 64.0, %v836_v29 }
 0x128   :  { %v423_v43 = vsel %vm421_vm1, %v422_v41, %v420_v42  ;;  %v565_v15 = vadd.f32 0.87758255, %v836_v29  ;;  %vm510_vm2 = vcmp.eq.s32.totalorder %v759_v51, %v504_v17  ;;  %v439_v47 = vmul.f32 56.165283, %v836_v29 }
 0x129   :  { %v485_v46 = vsel %vm469_vm0, %v571_v40, %v453_v52  ;;  %v447_v49 = vmul.f32 30.683235, %v423_v43  ;;  %v573_v62 = vadd.f32 -15.341618, %v431_v44  ;;  %vm512_vm4 = vcmp.eq.s32.totalorder %v769_v56, %v504_v17 }
 0x12a   :  { %v518_v54 = vsel %vm510_vm2, %v485_v46, %v429_v45  ;;  %vm471_vm3 = vcmp.le.f32.partialorder %v565_v15, 0.0 }
 0x12b   :  { %526 = vst [vmem:[#allocation5 + $0x28] sm:$0xff] %v518_v54  ;;  %v455_v55 = vsub.f32 %v439_v47, %v447_v49 }
 0x12d   :  { %v487_v63 = vsel %vm471_vm3, %v573_v62, %v455_v55 }
 0x12e   :  { %v520_v57 = vsel %vm512_vm4, %v487_v63, %v431_v44 }
 0x12f   :  { %528 = vst [vmem:[#allocation5 + $0x38] sm:$0xff] %v520_v57 }
 0x130   :  { %670 = shalt.err (!%p667_p12)
}
 0x131   :  { %s671_s9 = scalar_lea.hbm %s948_s3, 1024 }
 0x132   :  { %p672_p13 = scmp.ne.s32.totalorder %s948_s3, %s671_s9  ;;  %p675_p0 = scmp.lt.u32.totalorder %s671_s9, %s948_s3 }
 0x134   :  { %p677_p1 = pnand %p675_p0, %p672_p13 }
 0x136   :  { %680 = shalt.err (!%p677_p1)
}
 0x137   :  { %540 = dma.vmem_to_hbm [thread:$0]  %s535_s5, 1024, %s948_s3, [#allocation4], %s686_s22, %s686_s22, %s687_s23  }
 0x138   :  { %683 = dma.done.wait [#allocation4], 1024  }
 0x139   :  { %684 = vsyncadd [#allocation4], 4294966272 }
 0x13a   :  { %544 = vsyncpa [#allocation3], 1 }
 0x13b   :  { %545 = vsyncpa [#allocation4], 1 }

</bundles_post_ra>
